<compile_context>
chip_gen: v6e
topology: v6e:2x2x1
jax: 0.10.0
libtpu: 0.0.40
codegen_flags: <defaults>
</compile_context>

<pallas_src>
import functools

import jax
import jax.numpy as jnp
from jax.experimental import pallas as pl
from jax.experimental.pallas import tpu as pltpu

EPS = 1e-5  # nn.LayerNorm default eps


def _round_up(n, m):
    return ((n + m - 1) // m) * m


def _layernorm(h, gamma, beta):
    # One-pass variance (E[h^2] - mu^2): the two lane reductions are
    # independent and can overlap on the XLU.  Slightly less numerically
    # stable than the two-pass form, but fine in f32 for these magnitudes.
    mu = jnp.mean(h, axis=-1, keepdims=True)
    ms = jnp.mean(h * h, axis=-1, keepdims=True)
    var = jnp.maximum(ms - mu * mu, 0.0)
    return (h - mu) * jax.lax.rsqrt(var + EPS) * gamma + beta


def ddpg_critic_kernel(
    xa_ref, w1_ref, w2h_ref, w2a_ref, w3_ref, vecs_ref, b3_ref, o_ref,
    *, s_dim, a_dim, matmul_dtype, lane_dense_out,
):
    md = matmul_dtype
    xa = xa_ref[...]                              # (TB, S+A) f32

    # Packed per-feature rows, loaded once (hoisted; no per-use re-broadcast).
    vecs = vecs_ref[...]                          # (6, H) f32
    b1, g1, be1 = vecs[0:1], vecs[1:2], vecs[2:3]
    b2, g2, be2 = vecs[3:4], vecs[4:5], vecs[5:6]

    # ---- l1 + LayerNorm + ReLU ----------------------------------------------
    # w1 is zero-padded to (S+A, H) in the wrapper so the action columns of xa
    # contribute exactly zero -> no in-kernel slice of xa is needed for l1.
    # Weights arrive already in matmul_dtype (cast hoisted to the wrapper);
    # only the per-step activation cast remains here (free if md == f32).
    h = jnp.dot(xa.astype(md), w1_ref[...],
                preferred_element_type=jnp.float32) + b1
    h = _layernorm(h, g1, be1)
    h = jnp.maximum(h, 0.0)

    # ---- l2 on cat([h, a], 1) + LayerNorm + ReLU -----------------------------
    h2 = jnp.dot(h.astype(md), w2h_ref[...],
                 preferred_element_type=jnp.float32) + b2
    # The K=A action contraction is tiny: A unrolled VPU broadcast-FMAs
    # (dual-issue alongside the main K=H matmul) instead of a second MXU pass.
    w2a = w2a_ref[...]                            # (A, H) f32
    for k in range(a_dim):
        h2 = h2 + xa[:, s_dim + k:s_dim + k + 1] * w2a[k:k + 1, :]
    h2 = _layernorm(h2, g2, be2)
    h2 = jnp.maximum(h2, 0.0)

    # ---- l3 (scalar Q per row) ------------------------------------------------
    # NOTE: l3 stays in f32 even when matmul_dtype=bf16 (documented; bf16 runs
    # are not expected to match f32 bitwise).
    b3 = b3_ref[0]
    if lane_dense_out:
        # Small H: contract the (1, H) weight row against h2's hidden axis so
        # the TB batch rows land on the lane axis -> (1, TB) unmasked store.
        q = jax.lax.dot_general(w3_ref[...], h2, (((1,), (1,)), ((), ())),
                                preferred_element_type=jnp.float32)   # (1, TB)
        o_ref[...] = (q + b3).astype(o_ref.dtype)
    else:
        # Large H: lane-reduce instead, so no implicit XLU transpose of the
        # full (TB, H) tile; accept the narrow (TB, 1) store.
        q = jnp.sum(h2 * w3_ref[...], axis=-1, keepdims=True)          # (TB, 1)
        o_ref[...] = (q + b3).astype(o_ref.dtype)


def _choose_tile(B, S, A, H, max_block_b):
    """Pick the batch tile TB and a scoped-VMEM limit.

    Small batches: a single tile with block shape == full array dims (always
    legal, no padding).  Larger batches: TB is a multiple of 128 sized to
    roughly half of the chip's physical VMEM, so the same code stays inside
    v7x's 64 MiB while exploiting v5e/v6e's 128 MiB, and there are always
    >= 2 tiles so the 'parallel' axis can feed both v7x TensorCores.
    """
    try:
        vmem_phys = int(pltpu.get_tpu_info().vmem_capacity_bytes)
    except Exception:  # not on TPU / API unavailable -> conservative default
        vmem_phys = 64 * 1024 * 1024
    budget = max(16 << 20, min(vmem_phys // 2, 64 << 20))

    if B <= 256:
        return B, budget

    # Resident weights (double-buffered by the pipeline even though constant).
    weight_bytes = 2 * ((S + A) * H + H * H + A * H + 7 * H + 1) * 4
    # Per batch row: double-buffered xa tile + output + ~6 f32 H-wide
    # intermediates/temporaries (h, h2, LN temps, compiler headroom).
    row_bytes = 2 * (S + A) * 4 + 2 * 4 + 6 * H * 4
    tb = (budget - weight_bytes) // row_bytes
    tb = max(128, min(tb, _round_up(max_block_b, 128)))
    tb = (tb // 128) * 128
    # Ensure >= 2 tiles (v7x has 2 TCs; extra grid step is ~0.35us elsewhere).
    half = max(128, _round_up((B + 1) // 2, 128))
    tb = min(tb, half)
    return int(tb), budget


def ddpg_critic_forward(x, a, params, *, max_block_b=1024,
                        matmul_dtype=jnp.float32):
    """Full critic forward.  Batch is tiled with a 'parallel' grid; weights are
    held VMEM-resident via constant index_maps.  Output comes back as (B, 1).

    matmul_dtype=jnp.bfloat16 is recommended at training-scale H on *all*
    generations (the v5e MXU is bf16-native; LayerNorm/ReLU stay f32 here)."""
    B, S = x.shape
    A = a.shape[1]
    H = params["w1"].shape[1]

    # Merge state/action into one tiled input: one DMA stream per grid step.
    xa = jnp.concatenate([x, a], axis=1).astype(jnp.float32)          # (B, S+A)

    # Weight prep (wrapper side, once per call; no per-grid-step recast):
    #   * zero-pad w1 with A rows so xa @ w1p == x @ w1 exactly,
    #   * cast the MXU operands (w1p, w2h) to matmul_dtype here.
    w1p = jnp.concatenate(
        [params["w1"], jnp.zeros((A, H), params["w1"].dtype)], axis=0
    ).astype(matmul_dtype)                                            # (S+A, H)
    w2h = params["w2h"].astype(matmul_dtype)                          # (H, H)
    w2a = params["w2a"].astype(jnp.float32)                           # (A, H) VPU
    w3 = params["w3"].astype(jnp.float32)                             # (1, H)
    vecs = jnp.concatenate(
        [params["b1"], params["g1"], params["be1"],
         params["b2"], params["g2"], params["be2"]], axis=0)          # (6, H)
    b3 = params["b3"].reshape((1,)).astype(jnp.float32)

    TB, vmem_limit = _choose_tile(B, S, A, H, max_block_b)
    num_tiles = pl.cdiv(B, TB)   # ragged last tile handled by partial-block
                                 # masking (garbage rows are row-independent
                                 # and their stores are masked off) -> no
                                 # host-side jnp.pad of x/a.

    lane_dense = H <= 256        # see l3 layout heuristic in the kernel
    if lane_dense:
        out_shape = jax.ShapeDtypeStruct((1, B), jnp.float32)
        out_spec = pl.BlockSpec((1, TB), lambda i: (0, i))            # lane-dense
    else:
        out_shape = jax.ShapeDtypeStruct((B, 1), jnp.float32)
        out_spec = pl.BlockSpec((TB, 1), lambda i: (i, 0))

    kernel = functools.partial(ddpg_critic_kernel, s_dim=S, a_dim=A,
                               matmul_dtype=matmul_dtype,
                               lane_dense_out=lane_dense)

    out = pl.pallas_call(
        kernel,
        out_shape=out_shape,
        grid=(num_tiles,),
        in_specs=[
            pl.BlockSpec((TB, S + A), lambda i: (i, 0)),   # xa tile (per step)
            # Resident operands: constant index_map -> fetched once, reused.
            # TODO(synk): pipeline_mode=pl.Buffered(1) on these would halve
            # their VMEM footprint on v7x; left at the default for portability.
            pl.BlockSpec((S + A, H), lambda i: (0, 0)),    # w1 (zero-padded, md)
            pl.BlockSpec((H, H), lambda i: (0, 0)),        # w2h (md)
            pl.BlockSpec((A, H), lambda i: (0, 0)),        # w2a (f32, VPU path)
            pl.BlockSpec((1, H), lambda i: (0, 0)),        # w3 row (f32)
            pl.BlockSpec((6, H), lambda i: (0, 0)),        # b1,g1,be1,b2,g2,be2
            pl.BlockSpec(memory_space=pltpu.MemorySpace.SMEM),  # b3 scalar
        ],
        out_specs=out_spec,
        compiler_params=pltpu.CompilerParams(
            dimension_semantics=("parallel",),
            vmem_limit_bytes=int(vmem_limit),
        ),
    )(xa, w1p, w2h, w2a, w3, vecs, b3)

    return out.reshape(B, 1) if lane_dense else out


def init_params(key, state_dim, action_dim, hidden_size, init_w=0.003):
    """Mirrors DDPGCritic.init_weights: l1/l2 weights ~ fanin_init
    (U(-1/sqrt(fan_in), 1/sqrt(fan_in))), l3 weight ~ U(-init_w, init_w).
    Biases keep the PyTorch nn.Linear default U(-1/sqrt(fan_in), 1/sqrt(fan_in))
    (the provided module only re-initializes the l3 *weight*)."""
    ks = jax.random.split(key, 6)
    f32 = jnp.float32

    def u(k, shape, bound):
        return jax.random.uniform(k, shape, f32, -bound, bound)

    v1 = 1.0 / jnp.sqrt(state_dim)
    v2 = 1.0 / jnp.sqrt(hidden_size + action_dim)

    w2_full = u(ks[2], (hidden_size + action_dim, hidden_size), v2)
    return {
        # l1: torch weight (H, S) -> stored as (S, H)
        "w1": u(ks[0], (state_dim, hidden_size), v1),
        "b1": u(ks[1], (1, hidden_size), v1),
        "g1": jnp.ones((1, hidden_size), f32),
        "be1": jnp.zeros((1, hidden_size), f32),
        # l2: torch weight (H, H+A) -> stored as (H+A, H), split into h/a parts
        "w2h": w2_full[:hidden_size],
        "w2a": w2_full[hidden_size:],
        "b2": u(ks[3], (1, hidden_size), v2),
        "g2": jnp.ones((1, hidden_size), f32),
        "be2": jnp.zeros((1, hidden_size), f32),
        # l3: torch weight (1, H) -> stored as a (1, H) row for the kernel
        "w3": u(ks[4], (1, hidden_size), init_w),
        "b3": u(ks[5], (1, 1), 1.0 / jnp.sqrt(hidden_size)),
    }


def reference_forward(x, a, p):
    """Pure-JAX reference of the PyTorch forward for verification."""
    def ln(h, g, b):
        mu = jnp.mean(h, axis=-1, keepdims=True)
        var = jnp.mean((h - mu) ** 2, axis=-1, keepdims=True)
        return (h - mu) / jnp.sqrt(var + EPS) * g + b

    h = jax.nn.relu(ln(x @ p["w1"] + p["b1"], p["g1"], p["be1"]))
    z = jnp.concatenate([h, a], axis=1)
    w2 = jnp.concatenate([p["w2h"], p["w2a"]], axis=0)
    h2 = jax.nn.relu(ln(z @ w2 + p["b2"], p["g2"], p["be2"]))
    return h2 @ p["w3"].T + p["b3"]


if __name__ == "__main__":
    key = jax.random.PRNGKey(0)
    k1, k2, k3, k4, k5, k6, k7, k8 = jax.random.split(key, 8)

    # --- small demo: single tile, lane-dense (1, TB) output, small H ----------
    STATE_DIM, ACTION_DIM, HIDDEN = 16, 4, 32
    params = init_params(k1, STATE_DIM, ACTION_DIM, HIDDEN)
    B = 8
    x = jax.random.normal(k2, (B, STATE_DIM), jnp.float32)
    a = jax.random.normal(k3, (B, ACTION_DIM), jnp.float32)
    q = jax.block_until_ready(ddpg_critic_forward(x, a, params))
    q_ref = reference_forward(x, a, params)
    assert q.shape == (B, 1)
    assert jnp.allclose(q, q_ref, atol=5e-5, rtol=1e-4), "mismatch (small batch)"

    # --- ragged multi-tile batch: >=2 tiles, partial last block, no host pad --
    B2 = 300
    x2 = jax.random.normal(k4, (B2, STATE_DIM), jnp.float32)
    a2 = jax.random.normal(k5, (B2, ACTION_DIM), jnp.float32)
    q2 = jax.block_until_ready(ddpg_critic_forward(x2, a2, params))
    q2_ref = reference_forward(x2, a2, params)
    assert q2.shape == (B2, 1)
    assert jnp.allclose(q2, q2_ref, atol=5e-5, rtol=1e-4), "mismatch (tiled batch)"

    # --- larger hidden (H > 256): exercises the lane-reduce / (TB,1) l3 path ---
    HIDDEN3 = 512
    params3 = init_params(k6, STATE_DIM, ACTION_DIM, HIDDEN3)
    B3 = 10
    x3 = jax.random.normal(k7, (B3, STATE_DIM), jnp.float32)
    a3 = jax.random.normal(k8, (B3, ACTION_DIM), jnp.float32)
    q3 = jax.block_until_ready(ddpg_critic_forward(x3, a3, params3))
    q3_ref = reference_forward(x3, a3, params3)
    assert q3.shape == (B3, 1)
    assert jnp.allclose(q3, q3_ref, atol=5e-5, rtol=1e-4), "mismatch (large H)"

    print("KERNEL_OK")
</pallas_src>

<mosaic_0001>
module attributes {stable_mosaic.version = 11 : i64} {
  func.func @ddpg_critic_kernel(%arg0: i32, %arg1: memref<8x20xf32, #tpu.memory_space<vmem>>, %arg2: memref<20x32xf32, #tpu.memory_space<vmem>>, %arg3: memref<32x32xf32, #tpu.memory_space<vmem>>, %arg4: memref<4x32xf32, #tpu.memory_space<vmem>>, %arg5: memref<1x32xf32, #tpu.memory_space<vmem>>, %arg6: memref<6x32xf32, #tpu.memory_space<vmem>>, %arg7: memref<1xf32, #tpu.memory_space<smem>>, %arg8: memref<1x8xf32, #tpu.memory_space<vmem>>) attributes {dimension_semantics = [#tpu.dimension_semantics<parallel>], iteration_bounds = array<i64: 1>, scalar_prefetch = 0 : i64, scratch_operands = 0 : i64, tpu.core_type = #tpu.core_type<tc>, window_params = [{transform_indices = @transform_0, window_bounds = array<i64: 8, 20>}, {pipeline_mode = #tpu.pipeline_mode<synchronous>, transform_indices = @transform_1, window_bounds = array<i64: 20, 32>}, {pipeline_mode = #tpu.pipeline_mode<synchronous>, transform_indices = @transform_2, window_bounds = array<i64: 32, 32>}, {pipeline_mode = #tpu.pipeline_mode<synchronous>, transform_indices = @transform_3, window_bounds = array<i64: 4, 32>}, {pipeline_mode = #tpu.pipeline_mode<synchronous>, transform_indices = @transform_4, window_bounds = array<i64: 1, 32>}, {pipeline_mode = #tpu.pipeline_mode<synchronous>, transform_indices = @transform_5, window_bounds = array<i64: 6, 32>}, {transform_indices = @transform_6, window_bounds = array<i64: 1>}, {transform_indices = @transform_7, window_bounds = array<i64: 1, 8>}]} {
    %c0 = arith.constant 0 : index
    %c0_0 = arith.constant 0 : index
    %0 = vector.load %arg1[%c0, %c0_0] : memref<8x20xf32, #tpu.memory_space<vmem>>, vector<8x20xf32>
    %c0_1 = arith.constant 0 : index
    %c0_2 = arith.constant 0 : index
    %1 = vector.load %arg6[%c0_1, %c0_2] : memref<6x32xf32, #tpu.memory_space<vmem>>, vector<6x32xf32>
    %2 = vector.extract_strided_slice %1 {offsets = [0, 0], sizes = [1, 32], strides = [1, 1]} : vector<6x32xf32> to vector<1x32xf32>
    %3 = vector.extract_strided_slice %1 {offsets = [1, 0], sizes = [1, 32], strides = [1, 1]} : vector<6x32xf32> to vector<1x32xf32>
    %4 = vector.extract_strided_slice %1 {offsets = [2, 0], sizes = [1, 32], strides = [1, 1]} : vector<6x32xf32> to vector<1x32xf32>
    %5 = vector.extract_strided_slice %1 {offsets = [3, 0], sizes = [1, 32], strides = [1, 1]} : vector<6x32xf32> to vector<1x32xf32>
    %6 = vector.extract_strided_slice %1 {offsets = [4, 0], sizes = [1, 32], strides = [1, 1]} : vector<6x32xf32> to vector<1x32xf32>
    %7 = vector.extract_strided_slice %1 {offsets = [5, 0], sizes = [1, 32], strides = [1, 1]} : vector<6x32xf32> to vector<1x32xf32>
    %c0_3 = arith.constant 0 : index
    %c0_4 = arith.constant 0 : index
    %8 = vector.load %arg2[%c0_3, %c0_4] : memref<20x32xf32, #tpu.memory_space<vmem>>, vector<20x32xf32>
    %cst = arith.constant dense<0.000000e+00> : vector<8x32xf32>
    %9 = tpu.matmul %0, %8, %cst {dimension_numbers = #tpu.dot_dimension_numbers<[1], [0], [0], [1], [0, 0, 1, 1], [], []>} : vector<8x20xf32>, vector<20x32xf32>, vector<8x32xf32> -> vector<8x32xf32>
    %10 = vector.broadcast %2 : vector<1x32xf32> to vector<8x32xf32>
    %11 = arith.addf %9, %10 : vector<8x32xf32>
    %cst_5 = arith.constant dense<0.000000e+00> : vector<8xf32>
    %12 = vector.multi_reduction <add>, %11, %cst_5 [1] : vector<8x32xf32> to vector<8xf32>
    %13 = vector.shape_cast %12 : vector<8xf32> to vector<8x1xf32>
    %cst_6 = arith.constant 3.200000e+01 : f32
    %14 = vector.broadcast %cst_6 : f32 to vector<8x1xf32>
    %15 = arith.divf %13, %14 : vector<8x1xf32>
    %16 = arith.mulf %11, %11 : vector<8x32xf32>
    %cst_7 = arith.constant dense<0.000000e+00> : vector<8xf32>
    %17 = vector.multi_reduction <add>, %16, %cst_7 [1] : vector<8x32xf32> to vector<8xf32>
    %18 = vector.shape_cast %17 : vector<8xf32> to vector<8x1xf32>
    %cst_8 = arith.constant 3.200000e+01 : f32
    %19 = vector.broadcast %cst_8 : f32 to vector<8x1xf32>
    %20 = arith.divf %18, %19 : vector<8x1xf32>
    %21 = arith.mulf %15, %15 : vector<8x1xf32>
    %22 = arith.subf %20, %21 : vector<8x1xf32>
    %cst_9 = arith.constant 0.000000e+00 : f32
    %23 = vector.broadcast %cst_9 : f32 to vector<8x1xf32>
    %24 = arith.maximumf %22, %23 : vector<8x1xf32>
    %25 = vector.broadcast %15 : vector<8x1xf32> to vector<8x32xf32>
    %26 = arith.subf %11, %25 : vector<8x32xf32>
    %cst_10 = arith.constant 9.99999974E-6 : f32
    %27 = vector.broadcast %cst_10 : f32 to vector<8x1xf32>
    %28 = arith.addf %24, %27 : vector<8x1xf32>
    %29 = math.rsqrt %28 : vector<8x1xf32>
    %30 = vector.broadcast %29 : vector<8x1xf32> to vector<8x32xf32>
    %31 = arith.mulf %26, %30 : vector<8x32xf32>
    %32 = vector.broadcast %3 : vector<1x32xf32> to vector<8x32xf32>
    %33 = arith.mulf %31, %32 : vector<8x32xf32>
    %34 = vector.broadcast %4 : vector<1x32xf32> to vector<8x32xf32>
    %35 = arith.addf %33, %34 : vector<8x32xf32>
    %cst_11 = arith.constant 0.000000e+00 : f32
    %36 = vector.broadcast %cst_11 : f32 to vector<8x32xf32>
    %37 = arith.maximumf %35, %36 : vector<8x32xf32>
    %c0_12 = arith.constant 0 : index
    %c0_13 = arith.constant 0 : index
    %38 = vector.load %arg3[%c0_12, %c0_13] : memref<32x32xf32, #tpu.memory_space<vmem>>, vector<32x32xf32>
    %cst_14 = arith.constant dense<0.000000e+00> : vector<8x32xf32>
    %39 = tpu.matmul %37, %38, %cst_14 {dimension_numbers = #tpu.dot_dimension_numbers<[1], [0], [0], [1], [0, 0, 1, 1], [], []>} : vector<8x32xf32>, vector<32x32xf32>, vector<8x32xf32> -> vector<8x32xf32>
    %40 = vector.broadcast %5 : vector<1x32xf32> to vector<8x32xf32>
    %41 = arith.addf %39, %40 : vector<8x32xf32>
    %c0_15 = arith.constant 0 : index
    %c0_16 = arith.constant 0 : index
    %42 = vector.load %arg4[%c0_15, %c0_16] : memref<4x32xf32, #tpu.memory_space<vmem>>, vector<4x32xf32>
    %43 = vector.extract_strided_slice %0 {offsets = [0, 16], sizes = [8, 1], strides = [1, 1]} : vector<8x20xf32> to vector<8x1xf32>
    %44 = vector.extract_strided_slice %42 {offsets = [0, 0], sizes = [1, 32], strides = [1, 1]} : vector<4x32xf32> to vector<1x32xf32>
    %45 = vector.broadcast %43 : vector<8x1xf32> to vector<8x32xf32>
    %46 = vector.broadcast %44 : vector<1x32xf32> to vector<8x32xf32>
    %47 = arith.mulf %45, %46 : vector<8x32xf32>
    %48 = arith.addf %41, %47 : vector<8x32xf32>
    %49 = vector.extract_strided_slice %0 {offsets = [0, 17], sizes = [8, 1], strides = [1, 1]} : vector<8x20xf32> to vector<8x1xf32>
    %50 = vector.extract_strided_slice %42 {offsets = [1, 0], sizes = [1, 32], strides = [1, 1]} : vector<4x32xf32> to vector<1x32xf32>
    %51 = vector.broadcast %49 : vector<8x1xf32> to vector<8x32xf32>
    %52 = vector.broadcast %50 : vector<1x32xf32> to vector<8x32xf32>
    %53 = arith.mulf %51, %52 : vector<8x32xf32>
    %54 = arith.addf %48, %53 : vector<8x32xf32>
    %55 = vector.extract_strided_slice %0 {offsets = [0, 18], sizes = [8, 1], strides = [1, 1]} : vector<8x20xf32> to vector<8x1xf32>
    %56 = vector.extract_strided_slice %42 {offsets = [2, 0], sizes = [1, 32], strides = [1, 1]} : vector<4x32xf32> to vector<1x32xf32>
    %57 = vector.broadcast %55 : vector<8x1xf32> to vector<8x32xf32>
    %58 = vector.broadcast %56 : vector<1x32xf32> to vector<8x32xf32>
    %59 = arith.mulf %57, %58 : vector<8x32xf32>
    %60 = arith.addf %54, %59 : vector<8x32xf32>
    %61 = vector.extract_strided_slice %0 {offsets = [0, 19], sizes = [8, 1], strides = [1, 1]} : vector<8x20xf32> to vector<8x1xf32>
    %62 = vector.extract_strided_slice %42 {offsets = [3, 0], sizes = [1, 32], strides = [1, 1]} : vector<4x32xf32> to vector<1x32xf32>
    %63 = vector.broadcast %61 : vector<8x1xf32> to vector<8x32xf32>
    %64 = vector.broadcast %62 : vector<1x32xf32> to vector<8x32xf32>
    %65 = arith.mulf %63, %64 : vector<8x32xf32>
    %66 = arith.addf %60, %65 : vector<8x32xf32>
    %cst_17 = arith.constant dense<0.000000e+00> : vector<8xf32>
    %67 = vector.multi_reduction <add>, %66, %cst_17 [1] : vector<8x32xf32> to vector<8xf32>
    %68 = vector.shape_cast %67 : vector<8xf32> to vector<8x1xf32>
    %cst_18 = arith.constant 3.200000e+01 : f32
    %69 = vector.broadcast %cst_18 : f32 to vector<8x1xf32>
    %70 = arith.divf %68, %69 : vector<8x1xf32>
    %71 = arith.mulf %66, %66 : vector<8x32xf32>
    %cst_19 = arith.constant dense<0.000000e+00> : vector<8xf32>
    %72 = vector.multi_reduction <add>, %71, %cst_19 [1] : vector<8x32xf32> to vector<8xf32>
    %73 = vector.shape_cast %72 : vector<8xf32> to vector<8x1xf32>
    %cst_20 = arith.constant 3.200000e+01 : f32
    %74 = vector.broadcast %cst_20 : f32 to vector<8x1xf32>
    %75 = arith.divf %73, %74 : vector<8x1xf32>
    %76 = arith.mulf %70, %70 : vector<8x1xf32>
    %77 = arith.subf %75, %76 : vector<8x1xf32>
    %cst_21 = arith.constant 0.000000e+00 : f32
    %78 = vector.broadcast %cst_21 : f32 to vector<8x1xf32>
    %79 = arith.maximumf %77, %78 : vector<8x1xf32>
    %80 = vector.broadcast %70 : vector<8x1xf32> to vector<8x32xf32>
    %81 = arith.subf %66, %80 : vector<8x32xf32>
    %cst_22 = arith.constant 9.99999974E-6 : f32
    %82 = vector.broadcast %cst_22 : f32 to vector<8x1xf32>
    %83 = arith.addf %79, %82 : vector<8x1xf32>
    %84 = math.rsqrt %83 : vector<8x1xf32>
    %85 = vector.broadcast %84 : vector<8x1xf32> to vector<8x32xf32>
    %86 = arith.mulf %81, %85 : vector<8x32xf32>
    %87 = vector.broadcast %6 : vector<1x32xf32> to vector<8x32xf32>
    %88 = arith.mulf %86, %87 : vector<8x32xf32>
    %89 = vector.broadcast %7 : vector<1x32xf32> to vector<8x32xf32>
    %90 = arith.addf %88, %89 : vector<8x32xf32>
    %cst_23 = arith.constant 0.000000e+00 : f32
    %91 = vector.broadcast %cst_23 : f32 to vector<8x32xf32>
    %92 = arith.maximumf %90, %91 : vector<8x32xf32>
    %c0_24 = arith.constant 0 : index
    %93 = memref.load %arg7[%c0_24] : memref<1xf32, #tpu.memory_space<smem>>
    %c0_25 = arith.constant 0 : index
    %c0_26 = arith.constant 0 : index
    %94 = vector.load %arg5[%c0_25, %c0_26] : memref<1x32xf32, #tpu.memory_space<vmem>>, vector<1x32xf32>
    %cst_27 = arith.constant dense<0.000000e+00> : vector<1x8xf32>
    %95 = tpu.matmul %94, %92, %cst_27 {dimension_numbers = #tpu.dot_dimension_numbers<[1], [1], [0], [0], [0, 0, 1, 0], [], []>} : vector<1x32xf32>, vector<8x32xf32>, vector<1x8xf32> -> vector<1x8xf32>
    %96 = vector.broadcast %93 : f32 to vector<1x8xf32>
    %97 = arith.addf %95, %96 : vector<1x8xf32>
    %c0_28 = arith.constant 0 : index
    %c0_29 = arith.constant 0 : index
    %98 = vector.load %arg8[%c0_28, %c0_29] : memref<1x8xf32, #tpu.memory_space<vmem>>, vector<1x8xf32>
    tpu.vector_store %arg8[%c0_28, %c0_29], %97 {strides = array<i32>} : memref<1x8xf32, #tpu.memory_space<vmem>>, vector<1x8xf32>,
    return
  }
  func.func @transform_0(%arg0: i32) -> (i32, i32) {
    %c0_i32 = arith.constant 0 : i32
    %c0_i32_0 = arith.constant 0 : i32
    return %arg0, %c0_i32 : i32, i32
  }
  func.func @transform_1(%arg0: i32) -> (i32, i32) {
    %c0_i32 = arith.constant 0 : i32
    %c0_i32_0 = arith.constant 0 : i32
    %c0_i32_1 = arith.constant 0 : i32
    return %c0_i32, %c0_i32_0 : i32, i32
  }
  func.func @transform_2(%arg0: i32) -> (i32, i32) {
    %c0_i32 = arith.constant 0 : i32
    %c0_i32_0 = arith.constant 0 : i32
    %c0_i32_1 = arith.constant 0 : i32
    return %c0_i32, %c0_i32_0 : i32, i32
  }
  func.func @transform_3(%arg0: i32) -> (i32, i32) {
    %c0_i32 = arith.constant 0 : i32
    %c0_i32_0 = arith.constant 0 : i32
    %c0_i32_1 = arith.constant 0 : i32
    return %c0_i32, %c0_i32_0 : i32, i32
  }
  func.func @transform_4(%arg0: i32) -> (i32, i32) {
    %c0_i32 = arith.constant 0 : i32
    %c0_i32_0 = arith.constant 0 : i32
    %c0_i32_1 = arith.constant 0 : i32
    return %c0_i32, %c0_i32_0 : i32, i32
  }
  func.func @transform_5(%arg0: i32) -> (i32, i32) {
    %c0_i32 = arith.constant 0 : i32
    %c0_i32_0 = arith.constant 0 : i32
    %c0_i32_1 = arith.constant 0 : i32
    return %c0_i32, %c0_i32_0 : i32, i32
  }
  func.func @transform_6(%arg0: i32) -> i32 {
    %c0_i32 = arith.constant 0 : i32
    %c0_i32_0 = arith.constant 0 : i32
    return %c0_i32 : i32
  }
  func.func @transform_7(%arg0: i32) -> (i32, i32) {
    %c0_i32 = arith.constant 0 : i32
    %c0_i32_0 = arith.constant 0 : i32
    return %c0_i32, %arg0 : i32, i32
  }
}

</mosaic_0001>

<bundles_post_ra>
// kernel: tpu_custom_call.1
= control target key start
LH: loop header
LB: loop body
LE: loop exit
PB: predicated region body
PF: predicated region fallthrough
CT: control target
= control target key end

     0   :  { %13 = vsyncpa [#allocation4], 0  ;;  %s716_s0 = inlined_call_operand.hbm [shape: f32[8,20], index: 0, kind: input, shape index: {}]   ;;  %s717_s1 = inlined_call_operand.hbm [shape: f32[20,32], index: 1, kind: input, shape index: {}]   ;;  %s718_s2 = inlined_call_operand.hbm [shape: f32[32,32], index: 2, kind: input, shape index: {}]   ;;  %s719_s3 = inlined_call_operand.hbm [shape: f32[4,32], index: 3, kind: input, shape index: {}]   ;;  %s720_s4 = inlined_call_operand.vmem [shape: f32[1,32], index: 4, kind: input, shape index: {}]   ;;  %s721_s5 = inlined_call_operand.vmem [shape: f32[6,32], index: 5, kind: input, shape index: {}]   ;;  %s722_s6 = inlined_call_operand.<no memory space> [shape: f32[1], index: 6, kind: input, shape index: {}]   ;;  %s723_s7 = inlined_call_operand.hbm [shape: f32[1,8], index: 7, kind: output, shape index: {}]  }
   0x1   :  { %14 = vsyncpa [#allocation7], 0 }
   0x2   :  { %15 = vsyncpa [#allocation10], 0 }
   0x3   :  { %16 = vsyncpa [#allocation5], 0  ;;  %s613_s24 = smov [#allocation6]  }
   0x4   :  { %s32_s25 = sshll.u32 %s613_s24, 4  ;;  %s33_s25 = int_to_ptr.vmem [resolvable:$true] %s32_s25 }
   0x5   :  { %s513_s26 = scalar_lea.vmem %s33_s25, 384  ;;  %p518_p1 = scmp.lt.s32.totalorder %s33_s25, %s33_s25 }
   0x6   :  { %p514_p0 = scmp.ne.s32.totalorder %s33_s25, %s513_s26  ;;  %p519_p2 = scmp.lt.s32.totalorder %s513_s26, %s513_s26 }
   0x8   :  { %p520_p3 = por %p519_p2, %p518_p1 }
   0xa   :  { %p521_p4 = pnand %p520_p3, %p514_p0 }
   0xc   :  { %524 = shalt.err (!%p521_p4)
}
   0xd   :  { %s614_s27 = smov 128   ;;  %s615_s28 = smov 8  }
   0xe   :  { %38 = dma.hbm_to_vmem [thread:$0]  %s717_s1, 384, %s33_s25, [#allocation7], %s614_s27, %s614_s27, %s615_s28  }
   0xf   :  { %s616_s8 = smov [#allocation3]   ;;  %s617_s10 = smov [#allocation8]  }
  0x10   :  { %s23_s9 = sshll.u32 %s616_s8, 4  ;;  %s44_s11 = sshll.u32 %s617_s10, 4  ;;  %s24_s9 = int_to_ptr.vmem [resolvable:$true] %s23_s9  ;;  %s45_s11 = int_to_ptr.vmem [resolvable:$true] %s44_s11 }
  0x11   :  { %s533_s12 = scalar_lea.vmem %s24_s9, 128  ;;  %p538_p6 = scmp.lt.s32.totalorder %s24_s9, %s24_s9 }
  0x12   :  { %p534_p5 = scmp.ne.s32.totalorder %s24_s9, %s533_s12  ;;  %p539_p7 = scmp.lt.s32.totalorder %s533_s12, %s533_s12 }
  0x14   :  { %p540_p8 = por %p539_p7, %p538_p6 }
  0x16   :  { %p541_p9 = pnand %p540_p8, %p534_p5 }
  0x18   :  { %544 = shalt.err (!%p541_p9)
}
  0x19   :  { %26 = dma.hbm_to_vmem [thread:$0]  %s716_s0, 128, %s24_s9, [#allocation4]  }
  0x1a   :  { %s553_s15 = scalar_lea.vmem %s45_s11, 512  ;;  %p558_p11 = scmp.lt.s32.totalorder %s45_s11, %s45_s11 }
  0x1b   :  { %p554_p10 = scmp.ne.s32.totalorder %s45_s11, %s553_s15  ;;  %p559_p12 = scmp.lt.s32.totalorder %s553_s15, %s553_s15 }
  0x1d   :  { %p560_p13 = por %p559_p12, %p558_p11 }
  0x1f   :  { %p561_p0 = pnand %p560_p13, %p554_p10 }
  0x21   :  { %564 = shalt.err (!%p561_p0)
}
  0x22   :  { %50 = dma.hbm_to_vmem [thread:$0]  %s718_s2, 512, %s45_s11, [#allocation7], %s614_s27, %s614_s27, %s615_s28  }
  0x23   :  { %s618_s17 = smov [#allocation9]  }
  0x24   :  { %s57_s18 = sshll.u32 %s618_s17, 4  ;;  %s58_s18 = int_to_ptr.vmem [resolvable:$true] %s57_s18 }
  0x25   :  { %s573_s19 = scalar_lea.vmem %s58_s18, 64  ;;  %p578_p2 = scmp.lt.s32.totalorder %s58_s18, %s58_s18 }
  0x26   :  { %p574_p1 = scmp.ne.s32.totalorder %s58_s18, %s573_s19  ;;  %p579_p3 = scmp.lt.s32.totalorder %s573_s19, %s573_s19 }
  0x28   :  { %p580_p4 = por %p579_p3, %p578_p2 }
  0x2a   :  { %p581_p5 = pnand %p580_p4, %p574_p1 }
  0x2c   :  { %584 = shalt.err (!%p581_p5)
}
  0x2d   :  { %60 = dma.hbm_to_vmem [thread:$0]  %s719_s3, 64, %s58_s18, [#allocation10]  }
  0x2e   :  { %605 = dma.done.wait [#allocation4], 128  }
  0x2f   :  { %606 = vsyncadd [#allocation4], 4294967168 }
  0x30   :  { %607 = dma.done.wait [#allocation7], 896  }
  0x31   :  { %608 = vsyncadd [#allocation7], 4294966400 }
  0x32   :  { %609 = dma.done.wait [#allocation10], 64  }
  0x33   :  { %610 = vsyncadd [#allocation10], 4294967232  ;;  %v619_v0 = vmov 0.0   ;;  %vm620_vm0 = vmmov 0   ;;  %vm92_vm1 = vcmask 1043456   ;;  %v82_v2 = vld [vmem:[#allocation6 + $0x8] sm:$0xff]  ;;  %v84_v5 = vlaneseq }
  0x34   :  { %458 = vmatprep.subr.mxu0 %v619_v0  ;;  %464 = vmatprep.mubr.msk.f32.mxu0 %vm620_vm0, %v619_v0  ;;  %v83_v1 = vld [vmem:[#allocation6 + $0x10] sm:$0xf]  ;;  %v81_v3 = vld [vmem:[#allocation6] sm:$0xff]  ;;  %v79_v4 = vld [vmem:[#allocation3] sm:$0xff]  ;;  %vm88_vm2 = vcmask 162816   ;;  %vm166_vm3 = vcmask 261120  }
  0x35   :  { %467 = vmatprep.subr.mxu1 %v619_v0  ;;  %475 = vmatprep.mubr.msk.f32.mxu1 %vm620_vm0, %v619_v0  ;;  %v681_v6 = vshrl.u32 %v84_v5, 7  ;;  %v687_v8 = vld [vmem:[%s721_s5] sm:$0x3f]  ;;  %v198_v16 = vld [vmem:[#allocation8 + $0x18] sm:$0xff]  ;;  %v197_v17 = vld [vmem:[#allocation8 + $0x10] sm:$0xff]  ;;  %v621_v20 = vmov 16  }
  0x36   :  { %459 = vmatpush3.msk.msra.mxu0 %vm92_vm1, %v83_v1  ;;  %468 = vmatpush3.msra.mxu1 %v198_v16  ;;  %v196_v18 = vld [vmem:[#allocation8 + $0x8] sm:$0xff]  ;;  %v195_v19 = vld [vmem:[#allocation8] sm:$0xff]  ;;  %v622_v21 = vmov 18   ;;  %v623_v22 = vmov 17   ;;  %v624_v23 = vmov 19   ;;  %s625_s24 = smov [#allocation11]  }
  0x37   :  { %460 = vmatprep.subr.mxu0 %v619_v0  ;;  %v86_v7 = vsub.s32 0, %v681_v6  ;;  %469 = vmatprep.subr.mxu1 %v619_v0  ;;  %v186_v32 = vsub.s32 1, %v681_v6  ;;  %v191_v33 = vsub.s32 2, %v681_v6  ;;  %v201_v43 = vsub.s32 3, %v681_v6  ;;  %v276_v44 = vld [vmem:[#allocation9] sm:$0xf] }
  0x38   :  { %461 = vmatpush3.msra.mxu0 %v82_v2  ;;  %470 = vmatpush3.msra.mxu1 %v197_v17  ;;  %s431_s25 = sshll.u32 %s625_s24, 4  ;;  %vm423_vm4 = vcmask 57344   ;;  %s432_s25 = int_to_ptr.vmem [resolvable:$true] %s431_s25 }
  0x39   :  { %462 = vmatprep.subr.mxu0 %v619_v0  ;;  %v87_v9 = vrot.slane %v687_v8, %v86_v7  ;;  %471 = vmatprep.subr.mxu1 %v619_v0  ;;  %v187_v35 = vrot.slane %v687_v8, %v186_v32  ;;  %v192_v38 = vrot.slane %v687_v8, %v191_v33  ;;  %s585_s26 = scalar_lea.vmem %s432_s25, 16  ;;  %s589_s27 = scalar_lea.vmem %s432_s25, 32 }
  0x3a   :  { %463 = vmatpush3.msra.mxu0 %v81_v3  ;;  %472 = vmatpush3.msra.mxu1 %v196_v18  ;;  %v284_v46 = vrot.slane %v276_v44, %v86_v7  ;;  %v202_v47 = vrot.slane %v687_v8, %v201_v43  ;;  %v294_v48 = vrot.slane %v276_v44, %v186_v32  ;;  %p586_p6 = scmp.ne.s32.totalorder %s432_s25, %s585_s26  ;;  %p590_p7 = scmp.lt.s32.totalorder %s432_s25, %s432_s25 }
  0x3b   :  { %465 = vmatmul.mubr.msk.f32.vlgmr.msra.gmra.mxu0 %vm88_vm2, %v79_v4  ;;  %478 = vmatprep.subr.mxu0 %v619_v0  ;;  %v304_v49 = vrot.slane %v276_v44, %v191_v33  ;;  %v314_v55 = vrot.slane %v276_v44, %v201_v43  ;;  %p591_p8 = scmp.lt.s32.totalorder %s589_s27, %s585_s26 }
  0x3c   :  { %480 = vmatprep.mubr.msk.f32.mxu0 %vm620_vm0, %v619_v0  ;;  %473 = vmatprep.subr.mxu1 %v619_v0 }
  0x3d   :  { %474 = vmatpush3.msra.mxu1 %v195_v19  ;;  %496 = vset.pattern.permute.xlu1 %v621_v20  ;;  %p592_p9 = por %p591_p8, %p590_p7 }
  0x3e   :  { %498 = vset.pattern.permute.xlu0 %v622_v21  ;;  %278 = vperm.xlu1 %496, %v79_v4  }
  0x3f   :  { %p593_p10 = pnand %p592_p9, %p586_p6 }
  0x42   :  { %497 = vset.pattern.permute.xlu1 %v623_v22 }
  0x43   :  { %288 = vperm.xlu1 %497, %v79_v4  }
  0x47   :  { %499 = vset.pattern.permute.xlu1 %v624_v23 }
  0x48   :  { %308 = vperm.xlu1 %499, %v79_v4  }
  0xb9   :  { %v279_v42 = vpop.permute.xlu1 %278 }
  0xba   :  { %v285_v52 = vmul.f32 %v284_v46, %v279_v42 }
  0xbe   :  { %v289_v45 = vpop.permute.xlu1 %288 }
  0xbf   :  { %v295_v54 = vmul.f32 %v294_v48, %v289_v45 }
  0xc3   :  { %v309_v57 = vpop.permute.xlu1 %308 }
  0xc4   :  { %v315_v61 = vmul.f32 %v314_v55, %v309_v57 }
  0xfb   :  { %v162_v10 = vpop.f32.mrf.mxu0 }
  0xfc   :  { %v163_v11 = vadd.f32 %v162_v10, %v87_v9 }
  0xfd   :  { %v466_v12 = vpop.f32.mrf.mxu0 }
  0xfe   :  { %v167_v13 = vsel %vm166_vm3, %v163_v11, 0.0  ;;  %v172_v14 = vmul.f32 %v163_v11, %v163_v11 }
  0xff   :  { %168 = vadd.xlane.f32.xlu0 %v167_v13  ;;  %v335_v13 = vsub.s32 4, %v681_v6 }
 0x100   :  { %v173_v15 = vsel %vm166_vm3, %v172_v14, 0.0  ;;  %v340_v14 = vsub.s32 5, %v681_v6  ;;  %v346_v6 = vstv %s722_s6 }
 0x101   :  { %v336_v16 = vrot.slane %v687_v8, %v335_v13 }
 0x102   :  { %v341_v19 = vrot.slane %v687_v8, %v340_v14 }
 0x103   :  { %174 = vadd.xlane.f32.xlu0 %v173_v15 }
 0x119   :  { %298 = vperm.xlu0 %498, %v79_v4  }
 0x11d   :  { %500 = vset.pattern.permute.xlu0 %v624_v23  ;;  %v345_v23 = vld [vmem:[%s720_s4] sm:$0x1] }
 0x188   :  { %v169_v24 = vpop.xlane.xlu0 %168 }
 0x189   :  { %v171_v25 = vmul.f32 0.03125, %v169_v24 }
 0x18b   :  { %v177_v27 = vmul.f32 %v171_v25, %v171_v25  ;;  %v180_v34 = vsub.f32 %v163_v11, %v171_v25 }
 0x18c   :  { %v175_v26 = vpop.xlane.xlu0 %174 }
 0x18d   :  { %v176_v28 = vmul.f32 0.03125, %v175_v26 }
 0x18f   :  { %v178_v29 = vsub.f32 %v176_v28, %v177_v27 }
 0x191   :  { %v179_v30 = vmax.f32 %v178_v29, 0.0 }
 0x193   :  { %v181_v31 = vadd.f32 1e-05, %v179_v30 }
 0x194   :  { %v299_v51 = vpop.permute.xlu0 %298 }
 0x195   :  { %501 = vrsqrt.f32 %v181_v31  ;;  %v305_v59 = vmul.f32 %v304_v49, %v299_v51 }
 0x1a2   :  { %v502_v36 = vpop.eup %501 }
 0x1a3   :  { %v183_v37 = vmul.f32 %v502_v36, %v180_v34 }
 0x1a5   :  { %v188_v39 = vmul.f32 %v187_v35, %v183_v37 }
 0x1a7   :  { %v193_v40 = vadd.f32 %v192_v38, %v188_v39 }
 0x1a9   :  { %v194_v41 = vmax.f32 %v193_v40, 0.0 }
 0x1ab   :  { %476 = vmatmul.mubr.msk.f32.vlgmr.msra.gmra.mxu1 %vm166_vm3, %v194_v41 }
 0x26b   :  { %v272_v50 = vpop.f32.mrf.mxu1 }
 0x26c   :  { %v273_v53 = vadd.f32 %v272_v50, %v202_v47 }
 0x26d   :  { %v477_v56 = vpop.f32.mrf.mxu1 }
 0x26e   :  { %v286_v58 = vadd.f32 %v285_v52, %v273_v53 }
 0x270   :  { %v296_v60 = vadd.f32 %v295_v54, %v286_v58 }
 0x272   :  { %v306_v62 = vadd.f32 %v305_v59, %v296_v60 }
 0x274   :  { %v316_v63 = vadd.f32 %v315_v61, %v306_v62 }
 0x276   :  { %v317_v0 = vsel %vm166_vm3, %v316_v63, 0.0  ;;  %v321_v1 = vmul.f32 %v316_v63, %v316_v63 }
 0x277   :  { %318 = vadd.xlane.f32.xlu1 %v317_v0 }
 0x278   :  { %v322_v2 = vsel %vm166_vm3, %v321_v1, 0.0 }
 0x27b   :  { %323 = vadd.xlane.f32.xlu1 %v322_v2 }
 0x300   :  { %v319_v3 = vpop.xlane.xlu1 %318 }
 0x301   :  { %v320_v4 = vmul.f32 0.03125, %v319_v3 }
 0x303   :  { %v326_v7 = vmul.f32 %v320_v4, %v320_v4  ;;  %v329_v15 = vsub.f32 %v316_v63, %v320_v4 }
 0x304   :  { %v324_v5 = vpop.xlane.xlu1 %323 }
 0x305   :  { %v325_v9 = vmul.f32 0.03125, %v324_v5 }
 0x307   :  { %v327_v10 = vsub.f32 %v325_v9, %v326_v7 }
 0x309   :  { %v328_v11 = vmax.f32 %v327_v10, 0.0 }
 0x30b   :  { %v330_v12 = vadd.f32 1e-05, %v328_v11 }
 0x30d   :  { %503 = vrsqrt.f32 %v330_v12 }
 0x31a   :  { %v504_v17 = vpop.eup %503 }
 0x31b   :  { %v332_v18 = vmul.f32 %v504_v17, %v329_v15 }
 0x31d   :  { %v337_v20 = vmul.f32 %v336_v16, %v332_v18 }
 0x31f   :  { %v342_v21 = vadd.f32 %v341_v19, %v337_v20 }
 0x321   :  { %v343_v22 = vmax.f32 %v342_v21, 0.0 }
 0x323   :  { %479 = vmatpush3.xpose.msk.msra.mxu0 %vm166_vm3, %v343_v22 }
 0x326   :  { %481 = vmatmul.mubr.msk.f32.vlgmr.msra.gmra.mxu0 %vm166_vm3, %v345_v23 }
 0x3e6   :  { %v419_v24 = vpop.f32.mrf.mxu0 }
 0x3e7   :  { %v420_v8 = vadd.f32 %v419_v24, %v346_v6 }
 0x3e8   :  { %v482_v25 = vpop.f32.mrf.mxu0 }
 0x3e9   :  { %424 = vst.msk [vmem:[#allocation11] sm:$0x1] %vm423_vm4, %v420_v8 }
 0x3ea   :  { %596 = shalt.err (!%p593_p10)
}
 0x3eb   :  { %434 = dma.vmem_to_hbm [thread:$0]  %s432_s25, 16, %s723_s7, [#allocation5]  }
 0x3ec   :  { %611 = dma.done.wait [#allocation5], 16  }
 0x3ed   :  { %612 = vsyncadd [#allocation5], 4294967280 }
 0x3ee   :  { %438 = vsyncpa [#allocation4], 1 }
 0x3ef   :  { %439 = vsyncpa [#allocation7], 1 }
 0x3f0   :  { %440 = vsyncpa [#allocation10], 1 }
 0x3f1   :  { %441 = vsyncpa [#allocation5], 1 }

</bundles_post_ra>
